<compile_context>
chip_gen: v6e
topology: v6e:2x2x1
jax: 0.10.0
libtpu: 0.0.40
codegen_flags: <defaults>
</compile_context>

<pallas_src>
import functools

import jax
import jax.numpy as jnp
from jax.experimental import pallas as pl
from jax.experimental.pallas import tpu as pltpu

_MIB = 1024 * 1024
_LANE = 128
_NEG_PAD = -1e30          # bias pad for padded classes -> exp() == 0 in log_softmax
_BUFFERED_OK = [True]     # set to False if pipeline_mode=pl.Buffered is unsupported


# ---------------------------------------------------------------------------
# helpers
# ---------------------------------------------------------------------------
def _round_up(v, m):
    return ((v + m - 1) // m) * m


def _pad2d(w, rows, cols):
    r, c = w.shape
    if (r, c) == (rows, cols):
        return w
    return jnp.pad(w, ((0, rows - r), (0, cols - c)))


def _pad1d(b, n, value=0.0):
    if b.shape[0] == n:
        return b
    return jnp.pad(b, (0, n - b.shape[0]), constant_values=value)


def _pick_tile(n, cap):
    """Largest tile <= cap that divides n and is a multiple of 8 (n is a mult of 16)."""
    cap = max(8, min(int(cap), n))
    if n <= cap:
        return n
    for t in range(cap, 7, -1):
        if n % t == 0 and t % 8 == 0:
            return t
    return 8


def _vmem_capacity_bytes():
    try:
        cap = int(getattr(pltpu.get_tpu_info(), "vmem_capacity_bytes"))
        if cap > 0:
            return cap
    except Exception:
        pass
    return 64 * _MIB      # conservative (v7x-sized) fallback


def _vmem_limit_bytes():
    cap = _vmem_capacity_bytes()
    if cap >= 96 * _MIB:                                   # v5e / v6e: 128 MiB physical
        return int(min(cap - 24 * _MIB, 100 * _MIB))
    return int(max(32 * _MIB, min(cap - 20 * _MIB, 44 * _MIB)))   # v7x: 64 MiB physical


def _log_softmax_rows(y):
    m = jnp.max(y, axis=-1, keepdims=True)
    s = y - m
    return s - jnp.log(jnp.sum(jnp.exp(s), axis=-1, keepdims=True))


def _conv_tiling(np_, fp, cp, a_item, vmem_limit):
    """Pick (ti, tj, sj) from an honest VMEM budget."""
    # i-tile: rows of A per grid step; keep >= 2 i-tiles when possible so the
    # "parallel" axis can shard across v7x's two TensorCores.
    cap_i = 128
    if np_ >= 256:
        cap_i = min(cap_i, np_ // 2)
    ti = _pick_tile(np_, cap_i)

    headroom = 6 * _MIB                                          # Mosaic internal scratch
    y_reserve = max(2 * _MIB, 8 * np_ * fp * (8 + a_item))       # transient Y chunk (sj>=8)
    fixed = (3 * np_ * fp * 4        # resident H (+ in-kernel value copy, worst case)
             + 2 * fp * cp * 4       # W
             + 2 * 8 * cp * 4        # bias
             + ti * fp * 4           # f32 accumulator scratch
             + 2 * ti * cp * 4)      # output tile buffers
    avail = vmem_limit - headroom - y_reserve - fixed
    per_tj = 2 * ti * np_ * a_item   # double-buffered A stream bytes per unit of tj
    tj_cap = avail // per_tj if avail > per_tj * 8 else 8
    tj = _pick_tile(np_, min(np_, tj_cap))

    # j-sub-chunk: bounds the materialized hypergraph-signal block (sj*N, F)
    # while keeping the per-matmul contraction length sj*N large.
    sj = 8
    for d in range(8, tj + 1, 8):
        if tj % d == 0 and d * np_ * fp * (8 + a_item) <= y_reserve:
            sj = d
    return ti, tj, sj


# ---------------------------------------------------------------------------
# kernels
# ---------------------------------------------------------------------------
def linear_relu_kernel(x_ref, w_ref, b_ref, o_ref):
    y = jnp.dot(x_ref[...], w_ref[...], preferred_element_type=jnp.float32)
    o_ref[...] = jnp.maximum(y + b_ref[...], 0.0)


def tspatial_conv_kernel(a_ref, h_ref, w_ref, b_ref, o_ref, t_acc,
                         *, tj, sj, mxu_dtype, final_layer):
    """One (i-tile, j-tile) step of
         T[i,f] = sum_{j,k} A[i,j,k] * H[j,f] * H[k,f] ;   O = act(T @ W + b)

    a_ref : (TI, TJ*N) block of A reshaped to (N, N*N)  [rows=i, cols=(j,k)]
    h_ref : (N,  F)    full current features (k factor + j tile, sliced in-kernel)
    w, b  : (F, C), (1, C)
    o_ref : (TI, C)    output tile (constant block index across the j axis)
    t_acc : (TI, F)    f32 VMEM accumulator, lives across the j grid axis
    """
    gj = pl.program_id(1)

    @pl.when(gj == 0)
    def _init():
        t_acc[...] = jnp.zeros_like(t_acc)

    n, f = h_ref.shape
    h_all = h_ref[...]                                   # (N, F) k-factor

    def sub_step(s):
        # j rows handled by this sub-chunk (8-aligned start).
        j_start = pl.multiple_of(gj * tj + s * sj, 8)
        h_j = h_ref[pl.ds(j_start, sj), :]               # (sj, F) j-factor
        # hypergraph-signal chunk: Y[(j,k), f] = H[j,f] * H[k,f]
        y = (h_j[:, None, :] * h_all[None, :, :]).reshape(sj * n, f)
        c_start = s * (sj * n)                           # contiguous A columns
        if not isinstance(c_start, int):
            c_start = pl.multiple_of(c_start, 128)
        a_sub = a_ref[:, pl.ds(c_start, sj * n)]         # (TI, sj*N)
        t_acc[...] += jnp.dot(a_sub, y.astype(mxu_dtype),
                              preferred_element_type=jnp.float32)

    num_sub = tj // sj
    if num_sub <= 8:
        for s in range(num_sub):                          # static unroll
            sub_step(s)
    else:
        jax.lax.fori_loop(0, num_sub, lambda s, c: (sub_step(s), c)[1], 0)

    @pl.when(gj == pl.num_programs(1) - 1)
    def _finalize():
        out = jnp.dot(t_acc[...], w_ref[...],
                      preferred_element_type=jnp.float32) + b_ref[...]
        if final_layer:
            out = _log_softmax_rows(out)   # padded classes carry a -1e30 bias -> exp()==0
        else:
            out = jnp.maximum(out, 0.0)    # relu (dropout == identity in eval)
        o_ref[...] = out.astype(o_ref.dtype)


def fused_forward_kernel(a_ref, x_ref, *refs, num_convs):
    """Whole forward in one kernel (small problems): everything stays in VMEM.

    refs = (mlp_w, mlp_b, conv_w0, conv_b0, ..., conv_w{L-1}, conv_b{L-1}, o_ref)
    """
    o_ref = refs[-1]
    mlp_w, mlp_b = refs[0], refs[1]
    n = x_ref.shape[0]

    h = jnp.maximum(
        jnp.dot(x_ref[...], mlp_w[...], preferred_element_type=jnp.float32)
        + mlp_b[...], 0.0)

    a = a_ref[...]                                        # (N, N*N)
    for l in range(num_convs):
        w, b = refs[2 + 2 * l], refs[3 + 2 * l]
        f = h.shape[1]
        y = (h[:, None, :] * h[None, :, :]).reshape(n * n, f)
        t = jnp.dot(a, y, preferred_element_type=jnp.float32)           # (N, F)
        z = jnp.dot(t, w[...], preferred_element_type=jnp.float32) + b[...]
        h = jnp.maximum(z, 0.0) if l < num_convs - 1 else _log_softmax_rows(z)
    o_ref[...] = h.astype(o_ref.dtype)


# ---------------------------------------------------------------------------
# wrappers
# ---------------------------------------------------------------------------
def linear_relu(x, w, b, *, vmem_limit):
    n, d = x.shape
    f = w.shape[1]
    tm = _pick_tile(n, 512)
    return pl.pallas_call(
        linear_relu_kernel,
        out_shape=jax.ShapeDtypeStruct((n, f), jnp.float32),
        grid=(n // tm,),
        in_specs=[pl.BlockSpec((tm, d), lambda i: (i, 0)),
                  pl.BlockSpec((d, f), lambda i: (0, 0)),
                  pl.BlockSpec((1, f), lambda i: (0, 0))],
        out_specs=pl.BlockSpec((tm, f), lambda i: (i, 0)),
        compiler_params=pltpu.CompilerParams(
            dimension_semantics=("parallel",),
            vmem_limit_bytes=vmem_limit),
    )(x, w, b.reshape(1, f))


def tspatial_conv(a_flat, h, w, b, *, final_layer, vmem_limit):
    # a_flat: (N, N*N) in f32 or bf16   h: (N, F)   w: (F, C)   b: (C,)
    np_, f = h.shape
    c = w.shape[1]
    assert a_flat.shape == (np_, np_ * np_)
    a_item = jnp.dtype(a_flat.dtype).itemsize

    ti, tj, sj = _conv_tiling(np_, f, c, a_item, vmem_limit)
    grid = (np_ // ti, np_ // tj)

    kernel = functools.partial(tspatial_conv_kernel, tj=tj, sj=sj,
                               mxu_dtype=a_flat.dtype, final_layer=final_layer)

    cost = pl.CostEstimate(
        flops=int(2 * np_ ** 3 * f + np_ * np_ * f + 2 * np_ * f * c),
        transcendentals=int(np_ * c) if final_layer else 0,
        bytes_accessed=int(a_item * np_ ** 3 + 4 * (2 * np_ * f + f * c + np_ * c)),
    )
    b2 = b.reshape(1, c)

    def run(single_buffer_invariants):
        def inv_spec(shape):
            # grid-invariant operands: single-buffer them (no re-DMA needed).
            if single_buffer_invariants:
                return pl.BlockSpec(shape, lambda gi, gj: (0, 0),
                                    pipeline_mode=pl.Buffered(1))
            return pl.BlockSpec(shape, lambda gi, gj: (0, 0))

        return pl.pallas_call(
            kernel,
            out_shape=jax.ShapeDtypeStruct((np_, c), jnp.float32),
            grid=grid,
            in_specs=[
                pl.BlockSpec((ti, tj * np_), lambda gi, gj: (gi, gj)),  # A stream
                inv_spec((np_, f)),                                     # full H
                inv_spec((f, c)),                                       # W
                inv_spec((1, c)),                                       # bias
            ],
            out_specs=pl.BlockSpec((ti, c), lambda gi, gj: (gi, 0)),
            scratch_shapes=[pltpu.VMEM((ti, f), jnp.float32)],
            compiler_params=pltpu.CompilerParams(
                dimension_semantics=("parallel", "arbitrary"),
                vmem_limit_bytes=vmem_limit),
            cost_estimate=cost,
        )(a_flat, h, w, b2)

    if _BUFFERED_OK[0]:
        try:
            return run(True)
        except Exception:
            _BUFFERED_OK[0] = False     # pipeline_mode unsupported -> default buffering
    return run(False)


def _fused_fits(np_, d, fp, cp, num_convs, vmem_limit):
    a_bytes = 4 * np_ ** 3
    y_bytes = 4 * np_ * np_ * fp                          # materialized signal
    w_bytes = 4 * (d * fp + max(0, num_convs - 1) * fp * fp + fp * cp
                   + num_convs * cp + fp)
    act_bytes = 4 * np_ * (d + 3 * fp + cp)
    est = 2 * a_bytes + y_bytes + 2 * w_bytes + 2 * act_bytes + 6 * _MIB
    return est <= vmem_limit


def fused_forward(a_flat, x, mlp_w, mlp_b, convs, *, vmem_limit):
    np_, d = x.shape
    fp = mlp_w.shape[1]
    cp = convs[-1][0].shape[1]
    num_convs = len(convs)

    kernel = functools.partial(fused_forward_kernel, num_convs=num_convs)

    in_arrays = [a_flat, x, mlp_w, mlp_b.reshape(1, fp)]
    in_specs = [
        pl.BlockSpec(a_flat.shape, lambda i: (0, 0)),
        pl.BlockSpec((np_, d), lambda i: (0, 0)),
        pl.BlockSpec(mlp_w.shape, lambda i: (0, 0)),
        pl.BlockSpec((1, fp), lambda i: (0, 0)),
    ]
    for (w, b) in convs:
        in_arrays += [w, b.reshape(1, b.shape[0])]
        in_specs += [pl.BlockSpec(w.shape, lambda i: (0, 0)),
                     pl.BlockSpec((1, b.shape[0]), lambda i: (0, 0))]

    return pl.pallas_call(
        kernel,
        out_shape=jax.ShapeDtypeStruct((np_, cp), jnp.float32),
        grid=(1,),
        in_specs=in_specs,
        out_specs=pl.BlockSpec((np_, cp), lambda i: (0, 0)),
        compiler_params=pltpu.CompilerParams(
            dimension_semantics=("arbitrary",),
            vmem_limit_bytes=vmem_limit),
    )(*in_arrays)


def tspatial_hypergnn_forward(a, x, params, *, force_tiled=False,
                              a_stream_dtype=jnp.bfloat16):
    n = a.shape[0]
    d = x.shape[1]
    hid = params["mlp_w"].shape[1]
    num_classes = params["convs"][-1][0].shape[1]
    num_convs = len(params["convs"])

    vmem_limit = _vmem_limit_bytes()

    # (8,128)-legal padded sizes.  Zero padding is exact for this contraction:
    # padded A entries are 0, padded H/W columns are 0, padded classes get a
    # -1e30 bias so they vanish under the fused log_softmax.
    np_ = _round_up(max(n, 16), 16)
    fp = _round_up(hid, _LANE)
    cp = _round_up(num_classes, _LANE)

    a_p = a if np_ == n else jnp.pad(a, ((0, np_ - n),) * 3)
    x_p = x if np_ == n else jnp.pad(x, ((0, np_ - n), (0, 0)))
    # Free contiguous reshape of the N^3 tensor: rows = i, cols = flattened (j, k).
    a_flat = a_p.reshape(np_, np_ * np_)

    mlp_w = _pad2d(params["mlp_w"], d, fp)
    mlp_b = _pad1d(params["mlp_b"], fp)
    convs = []
    for li, (w, b) in enumerate(params["convs"]):
        last = li == num_convs - 1
        cout = cp if last else fp
        convs.append((_pad2d(w, fp, cout),
                      _pad1d(b, cout, _NEG_PAD if last else 0.0)))

    if (not force_tiled) and _fused_fits(np_, d, fp, cp, num_convs, vmem_limit):
        # Fully VMEM-resident single launch (no inter-layer HBM traffic).
        out = fused_forward(a_flat, x_p, mlp_w, mlp_b, convs, vmem_limit=vmem_limit)
    else:
        # General tiled path: HBM-bound on the N^3 stream -> stream A in bf16
        # (f32 MXU accumulation); one conv kernel per layer, log_softmax fused
        # into the last layer's epilogue.
        a_stream = a_flat.astype(a_stream_dtype)
        h = linear_relu(x_p, mlp_w, mlp_b, vmem_limit=vmem_limit)
        for (w, b) in convs[:-1]:
            h = tspatial_conv(a_stream, h, w, b, final_layer=False,
                              vmem_limit=vmem_limit)
        w, b = convs[-1]
        out = tspatial_conv(a_stream, h, w, b, final_layer=True,
                            vmem_limit=vmem_limit)

    return out[:n, :num_classes]


# ---------------------------------------------------------------------------
# Pure-JAX reference (full f32 precision)
# ---------------------------------------------------------------------------
def reference_forward(a, x, params):
    hp = jax.lax.Precision.HIGHEST
    h = jax.nn.relu(jnp.dot(x, params["mlp_w"], precision=hp) + params["mlp_b"])

    def conv(h, w, b):
        # T[i,f] = sum_{j,k} A[i,j,k] * H[j,f] * H[k,f]
        t = jnp.einsum("ijk,jf,kf->if", a, h, h, precision=hp)
        return jnp.dot(t, w, precision=hp) + b

    for (w, b) in params["convs"][:-1]:
        h = jax.nn.relu(conv(h, w, b))
    w, b = params["convs"][-1]
    h = conv(h, w, b)
    return jax.nn.log_softmax(h, axis=1)


# ---------------------------------------------------------------------------
# Main
# ---------------------------------------------------------------------------
if __name__ == "__main__":
    N = 16          # number of nodes
    INPUT_DIM = 4
    HID_DIM = 32
    NUM_CLASSES = 8
    NUM_LAYERS = 2  # 1 hidden T-spatial conv + 1 output conv

    key = jax.random.PRNGKey(0)
    keys = jax.random.split(key, 8)

    # 3rd-order adjacency tensor (scaled so the (j,k) aggregation behaves like
    # an average -> well-conditioned values) + node features.
    A = jax.random.uniform(keys[0], (N, N, N), dtype=jnp.float32) * (4.0 / (N * N))
    X = jax.random.normal(keys[1], (N, INPUT_DIM), dtype=jnp.float32)

    w_scale, b_scale = 0.5, 0.1
    params = {
        "mlp_w": w_scale * jax.random.normal(keys[2], (INPUT_DIM, HID_DIM), dtype=jnp.float32),
        "mlp_b": b_scale * jax.random.normal(keys[3], (HID_DIM,), dtype=jnp.float32),
        "convs": [
            (w_scale * jax.random.normal(keys[4], (HID_DIM, HID_DIM), dtype=jnp.float32),
             b_scale * jax.random.normal(keys[5], (HID_DIM,), dtype=jnp.float32)),
            (w_scale * jax.random.normal(keys[6], (HID_DIM, NUM_CLASSES), dtype=jnp.float32),
             b_scale * jax.random.normal(keys[7], (NUM_CLASSES,), dtype=jnp.float32)),
        ],
    }

    ref = reference_forward(A, X, params)

    # Fast path for small problems: whole forward in one pallas_call (f32).
    out_fused = jax.block_until_ready(tspatial_hypergnn_forward(A, X, params))
    err_fused = float(jnp.max(jnp.abs(out_fused - ref)))
    assert err_fused < 5e-2, f"fused path mismatch vs reference: {err_fused}"

    # General tiled path with f32 A stream (tight numerics check of the tiling).
    out_tiled_f32 = jax.block_until_ready(
        tspatial_hypergnn_forward(A, X, params, force_tiled=True,
                                  a_stream_dtype=jnp.float32))
    err_f32 = float(jnp.max(jnp.abs(out_tiled_f32 - ref)))
    assert err_f32 < 5e-2, f"tiled f32 path mismatch vs reference: {err_f32}"

    # Default production tiled path: bf16 A stream (halves the dominant HBM
    # traffic), f32 accumulation -> slightly looser tolerance.
    out_tiled_bf16 = jax.block_until_ready(
        tspatial_hypergnn_forward(A, X, params, force_tiled=True))
    err_bf16 = float(jnp.max(jnp.abs(out_tiled_bf16 - ref)))
    assert err_bf16 < 1e-1, f"tiled bf16 path mismatch vs reference: {err_bf16}"

    print("KERNEL_OK")
</pallas_src>

<mosaic_0001>
module attributes {stable_mosaic.version = 11 : i64} {
  func.func @fused_forward_kernel(%arg0: i32, %arg1: memref<16x256xf32, #tpu.memory_space<vmem>>, %arg2: memref<16x4xf32, #tpu.memory_space<vmem>>, %arg3: memref<4x128xf32, #tpu.memory_space<vmem>>, %arg4: memref<1x128xf32, #tpu.memory_space<vmem>>, %arg5: memref<128x128xf32, #tpu.memory_space<vmem>>, %arg6: memref<1x128xf32, #tpu.memory_space<vmem>>, %arg7: memref<128x128xf32, #tpu.memory_space<vmem>>, %arg8: memref<1x128xf32, #tpu.memory_space<vmem>>, %arg9: memref<16x128xf32, #tpu.memory_space<vmem>>) attributes {dimension_semantics = [#tpu.dimension_semantics<arbitrary>], iteration_bounds = array<i64: 1>, scalar_prefetch = 0 : i64, scratch_operands = 0 : i64, tpu.core_type = #tpu.core_type<tc>, window_params = [{pipeline_mode = #tpu.pipeline_mode<synchronous>, transform_indices = @transform_0, window_bounds = array<i64: 16, 256>}, {pipeline_mode = #tpu.pipeline_mode<synchronous>, transform_indices = @transform_1, window_bounds = array<i64: 16, 4>}, {pipeline_mode = #tpu.pipeline_mode<synchronous>, transform_indices = @transform_2, window_bounds = array<i64: 4, 128>}, {pipeline_mode = #tpu.pipeline_mode<synchronous>, transform_indices = @transform_3, window_bounds = array<i64: 1, 128>}, {pipeline_mode = #tpu.pipeline_mode<synchronous>, transform_indices = @transform_4, window_bounds = array<i64: 128, 128>}, {pipeline_mode = #tpu.pipeline_mode<synchronous>, transform_indices = @transform_5, window_bounds = array<i64: 1, 128>}, {pipeline_mode = #tpu.pipeline_mode<synchronous>, transform_indices = @transform_6, window_bounds = array<i64: 128, 128>}, {pipeline_mode = #tpu.pipeline_mode<synchronous>, transform_indices = @transform_7, window_bounds = array<i64: 1, 128>}, {pipeline_mode = #tpu.pipeline_mode<synchronous>, transform_indices = @transform_8, window_bounds = array<i64: 16, 128>}]} {
    %c0 = arith.constant 0 : index
    %c0_0 = arith.constant 0 : index
    %0 = vector.load %arg2[%c0, %c0_0] : memref<16x4xf32, #tpu.memory_space<vmem>>, vector<16x4xf32>
    %c0_1 = arith.constant 0 : index
    %c0_2 = arith.constant 0 : index
    %1 = vector.load %arg3[%c0_1, %c0_2] : memref<4x128xf32, #tpu.memory_space<vmem>>, vector<4x128xf32>
    %cst = arith.constant dense<0.000000e+00> : vector<16x128xf32>
    %2 = tpu.matmul %0, %1, %cst {dimension_numbers = #tpu.dot_dimension_numbers<[1], [0], [0], [1], [0, 0, 1, 1], [], []>} : vector<16x4xf32>, vector<4x128xf32>, vector<16x128xf32> -> vector<16x128xf32>
    %c0_3 = arith.constant 0 : index
    %c0_4 = arith.constant 0 : index
    %3 = vector.load %arg4[%c0_3, %c0_4] : memref<1x128xf32, #tpu.memory_space<vmem>>, vector<1x128xf32>
    %4 = vector.broadcast %3 : vector<1x128xf32> to vector<16x128xf32>
    %5 = arith.addf %2, %4 : vector<16x128xf32>
    %cst_5 = arith.constant 0.000000e+00 : f32
    %6 = vector.broadcast %cst_5 : f32 to vector<16x128xf32>
    %7 = arith.maximumf %5, %6 : vector<16x128xf32>
    %c0_6 = arith.constant 0 : index
    %c0_7 = arith.constant 0 : index
    %8 = vector.load %arg1[%c0_6, %c0_7] : memref<16x256xf32, #tpu.memory_space<vmem>>, vector<16x256xf32>
    %9 = vector.shape_cast %7 : vector<16x128xf32> to vector<16x1x128xf32>
    %10 = vector.shape_cast %7 : vector<16x128xf32> to vector<1x16x128xf32>
    %11 = vector.broadcast %9 : vector<16x1x128xf32> to vector<16x16x128xf32>
    %12 = vector.broadcast %10 : vector<1x16x128xf32> to vector<16x16x128xf32>
    %13 = arith.mulf %11, %12 : vector<16x16x128xf32>
    %14 = vector.shape_cast %13 : vector<16x16x128xf32> to vector<256x128xf32>
    %cst_8 = arith.constant dense<0.000000e+00> : vector<16x128xf32>
    %15 = tpu.matmul %8, %14, %cst_8 {dimension_numbers = #tpu.dot_dimension_numbers<[1], [0], [0], [1], [0, 0, 1, 1], [], []>} : vector<16x256xf32>, vector<256x128xf32>, vector<16x128xf32> -> vector<16x128xf32>
    %c0_9 = arith.constant 0 : index
    %c0_10 = arith.constant 0 : index
    %16 = vector.load %arg5[%c0_9, %c0_10] : memref<128x128xf32, #tpu.memory_space<vmem>>, vector<128x128xf32>
    %cst_11 = arith.constant dense<0.000000e+00> : vector<16x128xf32>
    %17 = tpu.matmul %15, %16, %cst_11 {dimension_numbers = #tpu.dot_dimension_numbers<[1], [0], [0], [1], [0, 0, 1, 1], [], []>} : vector<16x128xf32>, vector<128x128xf32>, vector<16x128xf32> -> vector<16x128xf32>
    %c0_12 = arith.constant 0 : index
    %c0_13 = arith.constant 0 : index
    %18 = vector.load %arg6[%c0_12, %c0_13] : memref<1x128xf32, #tpu.memory_space<vmem>>, vector<1x128xf32>
    %19 = vector.broadcast %18 : vector<1x128xf32> to vector<16x128xf32>
    %20 = arith.addf %17, %19 : vector<16x128xf32>
    %cst_14 = arith.constant 0.000000e+00 : f32
    %21 = vector.broadcast %cst_14 : f32 to vector<16x128xf32>
    %22 = arith.maximumf %20, %21 : vector<16x128xf32>
    %23 = vector.shape_cast %22 : vector<16x128xf32> to vector<16x1x128xf32>
    %24 = vector.shape_cast %22 : vector<16x128xf32> to vector<1x16x128xf32>
    %25 = vector.broadcast %23 : vector<16x1x128xf32> to vector<16x16x128xf32>
    %26 = vector.broadcast %24 : vector<1x16x128xf32> to vector<16x16x128xf32>
    %27 = arith.mulf %25, %26 : vector<16x16x128xf32>
    %28 = vector.shape_cast %27 : vector<16x16x128xf32> to vector<256x128xf32>
    %cst_15 = arith.constant dense<0.000000e+00> : vector<16x128xf32>
    %29 = tpu.matmul %8, %28, %cst_15 {dimension_numbers = #tpu.dot_dimension_numbers<[1], [0], [0], [1], [0, 0, 1, 1], [], []>} : vector<16x256xf32>, vector<256x128xf32>, vector<16x128xf32> -> vector<16x128xf32>
    %c0_16 = arith.constant 0 : index
    %c0_17 = arith.constant 0 : index
    %30 = vector.load %arg7[%c0_16, %c0_17] : memref<128x128xf32, #tpu.memory_space<vmem>>, vector<128x128xf32>
    %cst_18 = arith.constant dense<0.000000e+00> : vector<16x128xf32>
    %31 = tpu.matmul %29, %30, %cst_18 {dimension_numbers = #tpu.dot_dimension_numbers<[1], [0], [0], [1], [0, 0, 1, 1], [], []>} : vector<16x128xf32>, vector<128x128xf32>, vector<16x128xf32> -> vector<16x128xf32>
    %c0_19 = arith.constant 0 : index
    %c0_20 = arith.constant 0 : index
    %32 = vector.load %arg8[%c0_19, %c0_20] : memref<1x128xf32, #tpu.memory_space<vmem>>, vector<1x128xf32>
    %33 = vector.broadcast %32 : vector<1x128xf32> to vector<16x128xf32>
    %34 = arith.addf %31, %33 : vector<16x128xf32>
    %cst_21 = arith.constant dense<0xFF800000> : vector<16xf32>
    %35 = vector.multi_reduction <maximumf>, %34, %cst_21 [1] : vector<16x128xf32> to vector<16xf32>
    %36 = vector.shape_cast %35 : vector<16xf32> to vector<16x1xf32>
    %37 = vector.broadcast %36 : vector<16x1xf32> to vector<16x128xf32>
    %38 = arith.subf %34, %37 : vector<16x128xf32>
    %39 = math.exp %38 : vector<16x128xf32>
    %cst_22 = arith.constant dense<0.000000e+00> : vector<16xf32>
    %40 = vector.multi_reduction <add>, %39, %cst_22 [1] : vector<16x128xf32> to vector<16xf32>
    %41 = vector.shape_cast %40 : vector<16xf32> to vector<16x1xf32>
    %42 = math.log %41 : vector<16x1xf32>
    %43 = vector.broadcast %42 : vector<16x1xf32> to vector<16x128xf32>
    %44 = arith.subf %38, %43 : vector<16x128xf32>
    %c0_23 = arith.constant 0 : index
    %c0_24 = arith.constant 0 : index
    %45 = vector.load %arg9[%c0_23, %c0_24] : memref<16x128xf32, #tpu.memory_space<vmem>>, vector<16x128xf32>
    tpu.vector_store %arg9[%c0_23, %c0_24], %44 {strides = array<i32>} : memref<16x128xf32, #tpu.memory_space<vmem>>, vector<16x128xf32>,
    return
  }
  func.func @transform_0(%arg0: i32) -> (i32, i32) {
    %c0_i32 = arith.constant 0 : i32
    %c0_i32_0 = arith.constant 0 : i32
    %c0_i32_1 = arith.constant 0 : i32
    return %c0_i32, %c0_i32_0 : i32, i32
  }
  func.func @transform_1(%arg0: i32) -> (i32, i32) {
    %c0_i32 = arith.constant 0 : i32
    %c0_i32_0 = arith.constant 0 : i32
    %c0_i32_1 = arith.constant 0 : i32
    return %c0_i32, %c0_i32_0 : i32, i32
  }
  func.func @transform_2(%arg0: i32) -> (i32, i32) {
    %c0_i32 = arith.constant 0 : i32
    %c0_i32_0 = arith.constant 0 : i32
    %c0_i32_1 = arith.constant 0 : i32
    return %c0_i32, %c0_i32_0 : i32, i32
  }
  func.func @transform_3(%arg0: i32) -> (i32, i32) {
    %c0_i32 = arith.constant 0 : i32
    %c0_i32_0 = arith.constant 0 : i32
    %c0_i32_1 = arith.constant 0 : i32
    return %c0_i32, %c0_i32_0 : i32, i32
  }
  func.func @transform_4(%arg0: i32) -> (i32, i32) {
    %c0_i32 = arith.constant 0 : i32
    %c0_i32_0 = arith.constant 0 : i32
    %c0_i32_1 = arith.constant 0 : i32
    return %c0_i32, %c0_i32_0 : i32, i32
  }
  func.func @transform_5(%arg0: i32) -> (i32, i32) {
    %c0_i32 = arith.constant 0 : i32
    %c0_i32_0 = arith.constant 0 : i32
    %c0_i32_1 = arith.constant 0 : i32
    return %c0_i32, %c0_i32_0 : i32, i32
  }
  func.func @transform_6(%arg0: i32) -> (i32, i32) {
    %c0_i32 = arith.constant 0 : i32
    %c0_i32_0 = arith.constant 0 : i32
    %c0_i32_1 = arith.constant 0 : i32
    return %c0_i32, %c0_i32_0 : i32, i32
  }
  func.func @transform_7(%arg0: i32) -> (i32, i32) {
    %c0_i32 = arith.constant 0 : i32
    %c0_i32_0 = arith.constant 0 : i32
    %c0_i32_1 = arith.constant 0 : i32
    return %c0_i32, %c0_i32_0 : i32, i32
  }
  func.func @transform_8(%arg0: i32) -> (i32, i32) {
    %c0_i32 = arith.constant 0 : i32
    %c0_i32_0 = arith.constant 0 : i32
    %c0_i32_1 = arith.constant 0 : i32
    return %c0_i32, %c0_i32_0 : i32, i32
  }
}

</mosaic_0001>

<bundles_post_ra>
// kernel: tpu_custom_call.1
= control target key start
LH: loop header
LB: loop body
LE: loop exit
PB: predicated region body
PF: predicated region fallthrough
CT: control target
= control target key end

     0   :  { %13 = vsyncpa [#allocation3], 0  ;;  %s1537_s0 = inlined_call_operand.hbm [shape: f32[16,256], index: 0, kind: input, shape index: {}]   ;;  %s1538_s1 = inlined_call_operand.vmem [shape: f32[16,4], index: 1, kind: input, shape index: {}]   ;;  %s1539_s2 = inlined_call_operand.vmem [shape: f32[4,128], index: 2, kind: input, shape index: {}]   ;;  %s1540_s3 = inlined_call_operand.vmem [shape: f32[1,128], index: 3, kind: input, shape index: {}]   ;;  %s1541_s4 = inlined_call_operand.hbm [shape: f32[128,128], index: 4, kind: input, shape index: {}]   ;;  %s1542_s5 = inlined_call_operand.vmem [shape: f32[1,128], index: 5, kind: input, shape index: {}]   ;;  %s1543_s6 = inlined_call_operand.hbm [shape: f32[128,128], index: 6, kind: input, shape index: {}]   ;;  %s1544_s7 = inlined_call_operand.vmem [shape: f32[1,128], index: 7, kind: input, shape index: {}]   ;;  %s1545_s8 = inlined_call_operand.hbm [shape: f32[16,128], index: 8, kind: output, shape index: {}]  }
   0x1   :  { %14 = vsyncpa [#allocation6], 0 }
   0x2   :  { %15 = vsyncpa [#allocation4], 0  ;;  %s1284_s27 = smov [#allocation5]  }
   0x3   :  { %s39_s28 = sshll.u32 %s1284_s27, 4  ;;  %s40_s28 = int_to_ptr.vmem [resolvable:$true] %s39_s28 }
   0x4   :  { %s1206_s29 = scalar_lea.vmem %s40_s28, 2048  ;;  %p1211_p1 = scmp.lt.s32.totalorder %s40_s28, %s40_s28 }
   0x5   :  { %p1207_p0 = scmp.ne.s32.totalorder %s40_s28, %s1206_s29  ;;  %p1212_p2 = scmp.lt.s32.totalorder %s1206_s29, %s1206_s29 }
   0x7   :  { %p1213_p3 = por %p1212_p2, %p1211_p1 }
   0x9   :  { %p1214_p4 = pnand %p1213_p3, %p1207_p0 }
   0xb   :  { %1217 = shalt.err (!%p1214_p4)
}
   0xc   :  { %s1285_s30 = smov 128   ;;  %s1286_s9 = smov 8  }
   0xd   :  { %45 = dma.hbm_to_vmem [thread:$0]  %s1541_s4, 2048, %s40_s28, [#allocation6], %s1285_s30, %s1285_s30, %s1286_s9  }
   0xe   :  { %s1287_s12 = smov [#allocation2]  }
   0xf   :  { %s21_s13 = sshll.u32 %s1287_s12, 4  ;;  %s22_s13 = int_to_ptr.vmem [resolvable:$true] %s21_s13 }
  0x10   :  { %s1226_s14 = scalar_lea.vmem %s22_s13, 512  ;;  %p1231_p6 = scmp.lt.s32.totalorder %s22_s13, %s22_s13 }
  0x11   :  { %p1227_p5 = scmp.ne.s32.totalorder %s22_s13, %s1226_s14  ;;  %p1232_p7 = scmp.lt.s32.totalorder %s1226_s14, %s1226_s14 }
  0x13   :  { %p1233_p8 = por %p1232_p7, %p1231_p6 }
  0x15   :  { %p1234_p9 = pnand %p1233_p8, %p1227_p5 }
  0x17   :  { %1237 = shalt.err (!%p1234_p9)
}
  0x18   :  { %s1288_s15 = smov 256   ;;  %s1289_s16 = smov 16  }
  0x19   :  { %27 = dma.hbm_to_vmem [thread:$0]  %s1537_s0, 512, %s22_s13, [#allocation3], %s1288_s15, %s1288_s15, %s1289_s16  }
  0x1a   :  { %s1290_s19 = smov [#allocation7]  }
  0x1b   :  { %s53_s20 = sshll.u32 %s1290_s19, 4  ;;  %s54_s20 = int_to_ptr.vmem [resolvable:$true] %s53_s20 }
  0x1c   :  { %s1246_s4 = scalar_lea.vmem %s54_s20, 2048  ;;  %p1251_p11 = scmp.lt.s32.totalorder %s54_s20, %s54_s20 }
  0x1d   :  { %p1247_p10 = scmp.ne.s32.totalorder %s54_s20, %s1246_s4  ;;  %p1252_p12 = scmp.lt.s32.totalorder %s1246_s4, %s1246_s4 }
  0x1f   :  { %p1253_p13 = por %p1252_p12, %p1251_p11 }
  0x21   :  { %p1254_p0 = pnand %p1253_p13, %p1247_p10 }
  0x23   :  { %1257 = shalt.err (!%p1254_p0)
}
  0x24   :  { %59 = dma.hbm_to_vmem [thread:$0]  %s1543_s6, 2048, %s54_s20, [#allocation6], %s1285_s30, %s1285_s30, %s1286_s9  }
  0x25   :  { %1278 = dma.done.wait [#allocation3], 512  }
  0x26   :  { %1279 = vsyncadd [#allocation3], 4294966784 }
  0x27   :  { %1280 = dma.done.wait [#allocation6], 4096  }
  0x28   :  { %1281 = vsyncadd [#allocation6], 4294963200  ;;  %vm88_vm0 = vcmask 1043456   ;;  %vm81_vm1 = vcmask 31744   ;;  %v73_v0 = vld [vmem:[%s1539_s2] sm:$0xf]  ;;  %v179_v18 = vlaneseq }
  0x29   :  { %v71_v1 = vld [vmem:[%s1538_s1] sm:$0xff]  ;;  %v72_v2 = vld [vmem:[%s1538_s1 + $0x8] sm:$0xff]  ;;  %1106 = vmatprep.subr.msk.mxu0 %vm88_vm0, %v73_v0  ;;  %v475_v4 = vld [vmem:[#allocation5 + $0x78] sm:$0xff]  ;;  %v1291_v16 = vmov 1966171168  }
  0x2a   :  { %1108 = vmatprep.mubr.msk.f32.mxu0 %vm81_vm1, %v71_v1  ;;  %1107 = vmatpush3.msk.msra.mxu0 %vm88_vm0, %v73_v0  ;;  %v1362_v3 = vld [vmem:[#allocation2 + $0x8] sm:$0xff]  ;;  %v474_v5 = vld [vmem:[#allocation5 + $0x70] sm:$0xff]  ;;  %v472_v7 = vld [vmem:[#allocation5 + $0x60] sm:$0xff]  ;;  %v177_v17 = vunpack.c.l.s4 %v1291_v16  ;;  %v180_v23 = vshrl.u32 %v179_v18, 7 }
  0x2b   :  { %1109 = vmatmul.mubr.msk.f32.vlgmr.msra.gmra.mxu0 %vm81_vm1, %v72_v2  ;;  %449 = vmatprep.mubr.f32.mxu1 %v1362_v3  ;;  %v473_v6 = vld [vmem:[#allocation5 + $0x68] sm:$0xff]  ;;  %v471_v8 = vld [vmem:[#allocation5 + $0x58] sm:$0xff]  ;;  %v470_v9 = vld [vmem:[#allocation5 + $0x50] sm:$0xff] }
  0x2c   :  { %1111 = vmatprep.subr.mxu0 %v475_v4  ;;  %v469_v10 = vld [vmem:[#allocation5 + $0x48] sm:$0xff]  ;;  %v468_v11 = vld [vmem:[#allocation5 + $0x40] sm:$0xff]  ;;  %v467_v12 = vld [vmem:[#allocation5 + $0x38] sm:$0xff]  ;;  %v178_v22 = vunpack.c.0.s8 %v177_v17  ;;  %v1383_v39 = vsub.s32 0, %v180_v23 }
  0x2d   :  { %1112 = vmatpush3.msra.mxu0 %v475_v4  ;;  %v466_v13 = vld [vmem:[#allocation5 + $0x30] sm:$0xff]  ;;  %v465_v14 = vld [vmem:[#allocation5 + $0x28] sm:$0xff]  ;;  %v464_v15 = vld [vmem:[#allocation5 + $0x20] sm:$0xff] }
  0x2e   :  { %1113 = vmatprep.subr.mxu0 %v474_v5  ;;  %v985_v19 = vld [vmem:[%s1540_s3] ss:$0 sm:$0xff]  ;;  %v1372_v28 = vsub.s32 %v178_v22, %v180_v23 }
  0x2f   :  { %1114 = vmatpush3.msra.mxu0 %v474_v5 }
  0x30   :  { %1115 = vmatprep.subr.mxu0 %v473_v6 }
  0x31   :  { %1116 = vmatpush3.msra.mxu0 %v473_v6 }
  0x32   :  { %1117 = vmatprep.subr.mxu0 %v472_v7 }
  0x33   :  { %1118 = vmatpush3.msra.mxu0 %v472_v7 }
  0x34   :  { %1119 = vmatprep.subr.mxu0 %v471_v8 }
  0x35   :  { %1120 = vmatpush3.msra.mxu0 %v471_v8 }
  0x36   :  { %1121 = vmatprep.subr.mxu0 %v470_v9 }
  0x37   :  { %1122 = vmatpush3.msra.mxu0 %v470_v9 }
  0x38   :  { %1123 = vmatprep.subr.mxu0 %v469_v10 }
  0x39   :  { %1124 = vmatpush3.msra.mxu0 %v469_v10 }
  0x3a   :  { %1125 = vmatprep.subr.mxu0 %v468_v11 }
  0x3b   :  { %1126 = vmatpush3.msra.mxu0 %v468_v11 }
  0x3c   :  { %1127 = vmatprep.subr.mxu0 %v467_v12 }
  0x3d   :  { %1128 = vmatpush3.msra.mxu0 %v467_v12 }
  0x3e   :  { %1129 = vmatprep.subr.mxu0 %v466_v13 }
  0x3f   :  { %1130 = vmatpush3.msra.mxu0 %v466_v13 }
  0x40   :  { %1131 = vmatprep.subr.mxu0 %v465_v14 }
  0x41   :  { %1132 = vmatpush3.msra.mxu0 %v465_v14 }
  0x42   :  { %1133 = vmatprep.subr.mxu0 %v464_v15 }
  0x43   :  { %1134 = vmatpush3.msra.mxu0 %v464_v15 }
  0xeb   :  { %v1110_v20 = vpop.f32.mrf.mxu0 }
  0xec   :  { %v164_v21 = vadd.f32 %v1110_v20, %v985_v19 }
  0xed   :  { %v158_v24 = vpop.f32.mrf.mxu0 }
  0xee   :  { %v1368_v25 = vmax.f32 %v164_v21, 0.0  ;;  %v159_v26 = vadd.f32 %v985_v19, %v158_v24 }
  0xf0   :  { %v1370_v27 = vmax.f32 %v159_v26, 0.0  ;;  %v224_v29 = vcombine.high %v1368_v25, %v1368_v25  ;;  %v231_v42 = vrot.slane %v1368_v25, %v1372_v28 }
  0xf2   :  { %v238_v30 = vrot.slane %v224_v29, %v1372_v28  ;;  %v175_v31 = vcombine.high %v1370_v27, %v1370_v27  ;;  %v182_v46 = vrot.slane %v1370_v27, %v1372_v28  ;;  %v239_v50 = vcombine.high %v231_v42, %v231_v42 }
  0xf3   :  { %v247_v4 = vrot.slane %v231_v42, %v1372_v28 }
  0xf4   :  { %v240_v32 = vcombine.high %v238_v30, %v238_v30  ;;  %v189_v33 = vrot.slane %v175_v31, %v1372_v28  ;;  %v254_v34 = vrot.slane %v238_v30, %v1372_v28  ;;  %v190_v53 = vcombine.high %v182_v46, %v182_v46 }
  0xf5   :  { %v261_v58 = vrot.slane %v239_v50, %v1372_v28  ;;  %v198_v8 = vrot.slane %v182_v46, %v1372_v28  ;;  %v269_v13 = vcombine.high %v247_v4, %v247_v4  ;;  %v1444_v46 = vld [vmem:[#allocation2 + $0x18] sm:$0xff] }
  0xf6   :  { %v268_v35 = vrot.slane %v240_v32, %v1372_v28  ;;  %v191_v36 = vcombine.high %v189_v33, %v189_v33  ;;  %v205_v37 = vrot.slane %v189_v33, %v1372_v28  ;;  %v270_v41 = vcombine.high %v254_v34, %v254_v34 }
  0xf7   :  { %v212_v61 = vrot.slane %v190_v53, %v1372_v28  ;;  %v324_v1 = vrot.slane %v254_v34, %v1383_v39  ;;  %v271_v2 = vcombine.high %v261_v58, %v261_v58  ;;  %v220_v16 = vcombine.high %v198_v8, %v198_v8 }
  0xf8   :  { %v272_v38 = vcombine.high %v268_v35, %v268_v35  ;;  %v219_v40 = vrot.slane %v191_v36, %v1372_v28  ;;  %v221_v45 = vcombine.high %v205_v37, %v205_v37  ;;  %v332_v49 = vrot.slane %v270_v41, %v1383_v39 }
  0xf9   :  { %v328_v57 = vrot.slane %v268_v35, %v1383_v39  ;;  %v292_v6 = vrot.slane %v205_v37, %v1383_v39  ;;  %v222_v7 = vcombine.high %v212_v61, %v212_v61  ;;  %v378_v11 = vmul.f32 %v324_v1, %v1368_v25 }
  0xfa   :  { %v336_v43 = vrot.slane %v272_v38, %v1383_v39  ;;  %v223_v44 = vcombine.high %v219_v40, %v219_v40  ;;  %v300_v52 = vrot.slane %v221_v45, %v1383_v39  ;;  %v382_v56 = vmul.f32 %v332_v49, %v1368_v25  ;;  %v1442_v45 = vld [vmem:[#allocation2] sm:$0xff] }
  0xfb   :  { %v296_v60 = vrot.slane %v219_v40, %v1383_v39  ;;  %v381_v62 = vmul.f32 %v332_v49, %v1370_v27  ;;  %v380_v0 = vmul.f32 %v328_v57, %v1368_v25  ;;  %v379_v9 = vmul.f32 %v328_v57, %v1370_v27  ;;  %v460_v49 = vld [vmem:[#allocation5] sm:$0xff]  ;;  %v860_v57 = vld [vmem:[#allocation7 + $0x68] sm:$0xff] }
  0xfc   :  { %v384_v47 = vmul.f32 %v336_v43, %v1368_v25  ;;  %v304_v48 = vrot.slane %v223_v44, %v1383_v39  ;;  %v383_v54 = vmul.f32 %v336_v43, %v1370_v27  ;;  %v366_v59 = vmul.f32 %v300_v52, %v1368_v25 }
  0xfd   :  { %v365_v63 = vmul.f32 %v300_v52, %v1370_v27  ;;  %v364_v5 = vmul.f32 %v296_v60, %v1368_v25  ;;  %v363_v10 = vmul.f32 %v296_v60, %v1370_v27  ;;  %v320_v12 = vrot.slane %v271_v2, %v1383_v39  ;;  %v857_v60 = vld [vmem:[#allocation7 + $0x50] sm:$0xff]  ;;  %v851_v2 = vld [vmem:[#allocation7 + $0x20] sm:$0xff] }
  0xfe   :  { %994 = vmatprep.subr.mxu1 %v384_v47  ;;  %v368_v51 = vmul.f32 %v304_v48, %v1368_v25  ;;  %v367_v55 = vmul.f32 %v304_v48, %v1370_v27  ;;  %v362_v14 = vmul.f32 %v292_v6, %v1368_v25  ;;  %v288_v15 = vrot.slane %v222_v7, %v1383_v39  ;;  %v1448_v47 = vld [vmem:[#allocation2 + $0x10] sm:$0xff]  ;;  %v461_v48 = vld [vmem:[#allocation5 + $0x8] sm:$0xff] }
  0xff   :  { %v377_v17 = vmul.f32 %v324_v1, %v1370_v27  ;;  %v361_v18 = vmul.f32 %v292_v6, %v1370_v27  ;;  %v376_v19 = vmul.f32 %v320_v12, %v1368_v25  ;;  %v316_v20 = vrot.slane %v269_v13, %v1383_v39  ;;  %v852_v1 = vld [vmem:[#allocation7 + $0x28] sm:$0xff] }
 0x100   :  { %995 = vmatpush3.msra.mxu1 %v368_v51  ;;  %v360_v21 = vmul.f32 %v288_v15, %v1368_v25  ;;  %v284_v22 = vrot.slane %v220_v16, %v1383_v39  ;;  %v375_v23 = vmul.f32 %v320_v12, %v1370_v27  ;;  %v359_v24 = vmul.f32 %v288_v15, %v1370_v27 }
 0x101   :  { %996 = vmatprep.subr.mxu1 %v383_v54  ;;  %v374_v26 = vmul.f32 %v316_v20, %v1368_v25  ;;  %v312_v29 = vrot.slane %v261_v58, %v1383_v39  ;;  %v280_v31 = vrot.slane %v212_v61, %v1383_v39  ;;  %v373_v32 = vmul.f32 %v316_v20, %v1370_v27  ;;  %v859_v58 = vld [vmem:[#allocation7 + $0x60] sm:$0xff]  ;;  %v856_v61 = vld [vmem:[#allocation7 + $0x48] sm:$0xff] }
 0x102   :  { %997 = vmatpush3.msra.mxu1 %v367_v55  ;;  %v358_v30 = vmul.f32 %v284_v22, %v1368_v25  ;;  %v357_v33 = vmul.f32 %v284_v22, %v1370_v27  ;;  %v308_v35 = vrot.slane %v247_v4, %v1383_v39  ;;  %v276_v37 = vrot.slane %v198_v8, %v1383_v39  ;;  %v989_v4 = vld [vmem:[%s1542_s5] ss:$0 sm:$0xff] }
 0x103   :  { %998 = vmatprep.subr.mxu1 %v382_v56  ;;  %v372_v34 = vmul.f32 %v312_v29, %v1368_v25  ;;  %v356_v36 = vmul.f32 %v280_v31, %v1368_v25  ;;  %v371_v38 = vmul.f32 %v312_v29, %v1370_v27  ;;  %v355_v40 = vmul.f32 %v280_v31, %v1370_v27  ;;  %v861_v56 = vld [vmem:[#allocation7 + $0x70] sm:$0xff] }
 0x104   :  { %999 = vmatpush3.msra.mxu1 %v366_v59  ;;  %v370_v41 = vmul.f32 %v308_v35, %v1368_v25  ;;  %v354_v42 = vmul.f32 %v276_v37, %v1368_v25  ;;  %v369_v43 = vmul.f32 %v308_v35, %v1370_v27  ;;  %v353_v44 = vmul.f32 %v276_v37, %v1370_v27  ;;  %v463_v25 = vld [vmem:[#allocation5 + $0x18] sm:$0xff]  ;;  %v462_v27 = vld [vmem:[#allocation5 + $0x10] sm:$0xff] }
 0x105   :  { %1000 = vmatprep.subr.mxu1 %v381_v62  ;;  %1135 = vmatprep.subr.mxu0 %v463_v25  ;;  %v858_v59 = vld [vmem:[#allocation7 + $0x58] sm:$0xff]  ;;  %v855_v62 = vld [vmem:[#allocation7 + $0x40] sm:$0xff] }
 0x106   :  { %1001 = vmatpush3.msra.mxu1 %v365_v63  ;;  %1136 = vmatpush3.msra.mxu0 %v463_v25  ;;  %v854_v63 = vld [vmem:[#allocation7 + $0x38] sm:$0xff] }
 0x107   :  { %1002 = vmatprep.subr.mxu1 %v380_v0  ;;  %1137 = vmatprep.subr.mxu0 %v462_v27  ;;  %v853_v0 = vld [vmem:[#allocation7 + $0x30] sm:$0xff] }
 0x108   :  { %1003 = vmatpush3.msra.mxu1 %v364_v5  ;;  %1138 = vmatpush3.msra.mxu0 %v462_v27 }
 0x109   :  { %1004 = vmatprep.subr.mxu1 %v379_v9  ;;  %1139 = vmatprep.subr.mxu0 %v461_v48 }
 0x10a   :  { %1005 = vmatpush3.msra.mxu1 %v363_v10  ;;  %1140 = vmatpush3.msra.mxu0 %v461_v48 }
 0x10b   :  { %1006 = vmatprep.subr.mxu1 %v378_v11  ;;  %1141 = vmatprep.subr.mxu0 %v460_v49 }
 0x10c   :  { %1007 = vmatpush3.msra.mxu1 %v362_v14  ;;  %1142 = vmatpush3.msra.mxu0 %v460_v49 }
 0x10d   :  { %1008 = vmatprep.subr.mxu1 %v377_v17 }
 0x10e   :  { %1009 = vmatpush3.msra.mxu1 %v361_v18 }
 0x10f   :  { %1010 = vmatprep.subr.mxu1 %v376_v19 }
 0x110   :  { %1011 = vmatpush3.msra.mxu1 %v360_v21 }
 0x111   :  { %1012 = vmatprep.subr.mxu1 %v375_v23 }
 0x112   :  { %1013 = vmatpush3.msra.mxu1 %v359_v24 }
 0x113   :  { %1014 = vmatprep.subr.mxu1 %v374_v26 }
 0x114   :  { %1015 = vmatpush3.msra.mxu1 %v358_v30 }
 0x115   :  { %1016 = vmatprep.subr.mxu1 %v373_v32 }
 0x116   :  { %1017 = vmatpush3.msra.mxu1 %v357_v33 }
 0x117   :  { %1018 = vmatprep.subr.mxu1 %v372_v34 }
 0x118   :  { %1019 = vmatpush3.msra.mxu1 %v356_v36 }
 0x119   :  { %1020 = vmatprep.subr.mxu1 %v371_v38 }
 0x11a   :  { %1021 = vmatpush3.msra.mxu1 %v355_v40 }
 0x11b   :  { %1022 = vmatprep.subr.mxu1 %v370_v41 }
 0x11c   :  { %1023 = vmatpush3.msra.mxu1 %v354_v42 }
 0x11d   :  { %1024 = vmatprep.subr.mxu1 %v369_v43 }
 0x11e   :  { %1025 = vmatpush3.msra.mxu1 %v353_v44 }
 0x11f   :  { %450 = vmatmul.mubr.f32.vlgmr.msra.gmra.mxu1 %v1442_v45 }
 0x120   :  { %454 = vmatprep.mubr.f32.mxu1 %v1444_v46 }
 0x123   :  { %455 = vmatmul.mubr.f32.gmra.mxu1 %v1448_v47 }
 0x124   :  { %836 = vmatprep.mubr.f32.mxu1 %v1362_v3  ;;  %v862_v3 = vld [vmem:[#allocation7 + $0x78] sm:$0xff] }
 0x125   :  { %1146 = vmatprep.subr.mxu0 %v862_v3 }
 0x1df   :  { %v1026_v50 = vpop.f32.mrf.mxu1 }
 0x1e1   :  { %v1027_v51 = vpop.f32.mrf.mxu1 }
 0x1e2   :  { %v1028_v52 = vadd.f32 %v1027_v51, %v1026_v50 }
 0x1e3   :  { %v1029_v53 = vpop.f32.mrf.mxu1 }
 0x1e4   :  { %1143 = vmatprep.mubr.f32.mxu0 %v1028_v52 }
 0x1e5   :  { %v1030_v54 = vpop.f32.mrf.mxu1 }
 0x1e6   :  { %v1031_v55 = vadd.f32 %v1030_v54, %v1029_v53 }
 0x1e8   :  { %1144 = vmatmul.mubr.f32.vlgmr.msra.gmra.mxu0 %v1031_v55 }
 0x1e9   :  { %1147 = vmatpush3.msra.mxu0 %v862_v3 }
 0x1ea   :  { %1148 = vmatprep.subr.mxu0 %v861_v56 }
 0x1eb   :  { %1149 = vmatpush3.msra.mxu0 %v861_v56 }
 0x1ec   :  { %1150 = vmatprep.subr.mxu0 %v860_v57 }
 0x1ed   :  { %1151 = vmatpush3.msra.mxu0 %v860_v57 }
 0x1ee   :  { %1152 = vmatprep.subr.mxu0 %v859_v58 }
 0x1ef   :  { %1153 = vmatpush3.msra.mxu0 %v859_v58 }
 0x1f0   :  { %1154 = vmatprep.subr.mxu0 %v858_v59 }
 0x1f1   :  { %1155 = vmatpush3.msra.mxu0 %v858_v59 }
 0x1f2   :  { %1156 = vmatprep.subr.mxu0 %v857_v60 }
 0x1f3   :  { %1157 = vmatpush3.msra.mxu0 %v857_v60 }
 0x1f4   :  { %1158 = vmatprep.subr.mxu0 %v856_v61 }
 0x1f5   :  { %1159 = vmatpush3.msra.mxu0 %v856_v61 }
 0x1f6   :  { %1160 = vmatprep.subr.mxu0 %v855_v62 }
 0x1f7   :  { %1161 = vmatpush3.msra.mxu0 %v855_v62 }
 0x1f8   :  { %1162 = vmatprep.subr.mxu0 %v854_v63 }
 0x1f9   :  { %1163 = vmatpush3.msra.mxu0 %v854_v63 }
 0x1fa   :  { %1164 = vmatprep.subr.mxu0 %v853_v0 }
 0x1fb   :  { %1165 = vmatpush3.msra.mxu0 %v853_v0 }
 0x1fc   :  { %1166 = vmatprep.subr.mxu0 %v852_v1 }
 0x1fd   :  { %1167 = vmatpush3.msra.mxu0 %v852_v1 }
 0x1fe   :  { %1168 = vmatprep.subr.mxu0 %v851_v2 }
 0x1ff   :  { %1169 = vmatpush3.msra.mxu0 %v851_v2 }
 0x2a8   :  { %v1145_v5 = vpop.f32.mrf.mxu0 }
 0x2a9   :  { %v555_v6 = vadd.f32 %v1145_v5, %v989_v4 }
 0x2aa   :  { %v549_v7 = vpop.f32.mrf.mxu0 }
 0x2ab   :  { %v1455_v8 = vmax.f32 %v555_v6, 0.0  ;;  %v550_v9 = vadd.f32 %v989_v4, %v549_v7 }
 0x2ad   :  { %v1457_v10 = vmax.f32 %v550_v9, 0.0  ;;  %v611_v11 = vcombine.high %v1455_v8, %v1455_v8  ;;  %v618_v23 = vrot.slane %v1455_v8, %v1372_v28 }
 0x2af   :  { %v625_v12 = vrot.slane %v611_v11, %v1372_v28  ;;  %v562_v13 = vcombine.high %v1457_v10, %v1457_v10  ;;  %v569_v30 = vrot.slane %v1457_v10, %v1372_v28  ;;  %v626_v34 = vcombine.high %v618_v23, %v618_v23 }
 0x2b0   :  { %v634_v53 = vrot.slane %v618_v23, %v1372_v28 }
 0x2b1   :  { %v627_v14 = vcombine.high %v625_v12, %v625_v12  ;;  %v576_v15 = vrot.slane %v562_v13, %v1372_v28  ;;  %v641_v16 = vrot.slane %v625_v12, %v1372_v28  ;;  %v577_v37 = vcombine.high %v569_v30, %v569_v30 }
 0x2b2   :  { %v648_v43 = vrot.slane %v626_v34, %v1372_v28  ;;  %v585_v56 = vrot.slane %v569_v30, %v1372_v28  ;;  %v656_v61 = vcombine.high %v634_v53, %v634_v53  ;;  %v849_v30 = vld [vmem:[#allocation7 + $0x10] sm:$0xff] }
 0x2b3   :  { %v655_v17 = vrot.slane %v627_v14, %v1372_v28  ;;  %v578_v18 = vcombine.high %v576_v15, %v576_v15  ;;  %v592_v19 = vrot.slane %v576_v15, %v1372_v28  ;;  %v657_v22 = vcombine.high %v641_v16, %v641_v16 }
 0x2b4   :  { %v599_v27 = vrot.slane %v577_v37, %v1372_v28  ;;  %v711_v51 = vrot.slane %v641_v16, %v1383_v39  ;;  %v658_v52 = vcombine.high %v648_v43, %v648_v43  ;;  %v607_v0 = vcombine.high %v585_v56, %v585_v56 }
 0x2b5   :  { %v659_v20 = vcombine.high %v655_v17, %v655_v17  ;;  %v606_v21 = vrot.slane %v578_v18, %v1372_v28  ;;  %v608_v29 = vcombine.high %v592_v19, %v592_v19  ;;  %v719_v33 = vrot.slane %v657_v22, %v1383_v39 }
 0x2b6   :  { %v715_v42 = vrot.slane %v655_v17, %v1383_v39  ;;  %v679_v55 = vrot.slane %v592_v19, %v1383_v39  ;;  %v609_v3 = vcombine.high %v599_v27, %v599_v27  ;;  %v765_v59 = vmul.f32 %v711_v51, %v1455_v8 }
 0x2b7   :  { %v723_v24 = vrot.slane %v659_v20, %v1383_v39  ;;  %v610_v26 = vcombine.high %v606_v21, %v606_v21  ;;  %v687_v36 = vrot.slane %v608_v29, %v1383_v39  ;;  %v769_v41 = vmul.f32 %v719_v33, %v1455_v8 }
 0x2b8   :  { %v683_v25 = vrot.slane %v606_v21, %v1383_v39  ;;  %v768_v48 = vmul.f32 %v719_v33, %v1457_v10  ;;  %v767_v50 = vmul.f32 %v715_v42, %v1455_v8  ;;  %v766_v57 = vmul.f32 %v715_v42, %v1457_v10 }
 0x2b9   :  { %v771_v31 = vmul.f32 %v723_v24, %v1455_v8  ;;  %v691_v32 = vrot.slane %v610_v26, %v1383_v39  ;;  %v770_v38 = vmul.f32 %v723_v24, %v1457_v10  ;;  %v753_v44 = vmul.f32 %v687_v36, %v1455_v8 }
 0x2ba   :  { %v752_v49 = vmul.f32 %v687_v36, %v1457_v10  ;;  %v751_v54 = vmul.f32 %v683_v25, %v1455_v8  ;;  %v750_v58 = vmul.f32 %v683_v25, %v1457_v10  ;;  %v707_v60 = vrot.slane %v658_v52, %v1383_v39 }
 0x2bb   :  { %1050 = vmatprep.subr.mxu1 %v771_v31  ;;  %v755_v35 = vmul.f32 %v691_v32, %v1455_v8  ;;  %v754_v40 = vmul.f32 %v691_v32, %v1457_v10  ;;  %v749_v62 = vmul.f32 %v679_v55, %v1455_v8  ;;  %v675_v63 = vrot.slane %v609_v3, %v1383_v39  ;;  %v847_v31 = vld [vmem:[#allocation7] sm:$0xff] }
 0x2bc   :  { %v764_v28 = vmul.f32 %v711_v51, %v1457_v10  ;;  %v748_v1 = vmul.f32 %v679_v55, %v1457_v10  ;;  %v763_v2 = vmul.f32 %v707_v60, %v1455_v8  ;;  %v703_v4 = vrot.slane %v656_v61, %v1383_v39 }
 0x2bd   :  { %1051 = vmatpush3.msra.mxu1 %v755_v35  ;;  %v747_v5 = vmul.f32 %v675_v63, %v1455_v8  ;;  %v671_v6 = vrot.slane %v607_v0, %v1383_v39  ;;  %v762_v7 = vmul.f32 %v707_v60, %v1457_v10  ;;  %v746_v9 = vmul.f32 %v675_v63, %v1457_v10  ;;  %v990_v35 = vld [vmem:[%s1544_s7] ss:$0 sm:$0xff]  ;;  %s1292_s7 = smov [#allocation8]  }
 0x2be   :  { %1052 = vmatprep.subr.mxu1 %v770_v38  ;;  %v761_v11 = vmul.f32 %v703_v4, %v1455_v8  ;;  %v699_v12 = vrot.slane %v648_v43, %v1383_v39  ;;  %v667_v14 = vrot.slane %v599_v27, %v1383_v39  ;;  %v760_v15 = vmul.f32 %v703_v4, %v1457_v10  ;;  %s972_s29 = sshll.u32 %s1292_s7, 4  ;;  %s973_s29 = int_to_ptr.vmem [resolvable:$true] %s972_s29 }
 0x2bf   :  { %1053 = vmatpush3.msra.mxu1 %v754_v40  ;;  %v745_v13 = vmul.f32 %v671_v6, %v1455_v8  ;;  %v744_v16 = vmul.f32 %v671_v6, %v1457_v10  ;;  %v695_v18 = vrot.slane %v634_v53, %v1383_v39  ;;  %v663_v20 = vrot.slane %v585_v56, %v1383_v39  ;;  %v850_v39 = vld [vmem:[#allocation7 + $0x18] sm:$0xff]  ;;  %s1258_s10 = scalar_lea.vmem %s973_s29, 256  ;;  %p1263_p2 = scmp.lt.s32.totalorder %s973_s29, %s973_s29 }
 0x2c0   :  { %1054 = vmatprep.subr.mxu1 %v769_v41  ;;  %v759_v17 = vmul.f32 %v699_v12, %v1455_v8  ;;  %v743_v19 = vmul.f32 %v667_v14, %v1455_v8  ;;  %v758_v21 = vmul.f32 %v699_v12, %v1457_v10  ;;  %v742_v22 = vmul.f32 %v667_v14, %v1457_v10  ;;  %p1259_p1 = scmp.ne.s32.totalorder %s973_s29, %s1258_s10  ;;  %p1264_p3 = scmp.lt.s32.totalorder %s1258_s10, %s1258_s10 }
 0x2c1   :  { %1055 = vmatpush3.msra.mxu1 %v753_v44  ;;  %v757_v23 = vmul.f32 %v695_v18, %v1455_v8  ;;  %v741_v24 = vmul.f32 %v663_v20, %v1455_v8  ;;  %v756_v26 = vmul.f32 %v695_v18, %v1457_v10  ;;  %v740_v29 = vmul.f32 %v663_v20, %v1457_v10  ;;  %v848_v8 = vld [vmem:[#allocation7 + $0x8] sm:$0xff] }
 0x2c2   :  { %1056 = vmatprep.subr.mxu1 %v768_v48  ;;  %1170 = vmatprep.subr.mxu0 %v850_v39  ;;  %p1265_p4 = por %p1264_p3, %p1263_p2 }
 0x2c3   :  { %1057 = vmatpush3.msra.mxu1 %v752_v49  ;;  %1171 = vmatpush3.msra.mxu0 %v850_v39 }
 0x2c4   :  { %1058 = vmatprep.subr.mxu1 %v767_v50  ;;  %1172 = vmatprep.subr.mxu0 %v849_v30  ;;  %p1266_p5 = pnand %p1265_p4, %p1259_p1 }
 0x2c5   :  { %1059 = vmatpush3.msra.mxu1 %v751_v54  ;;  %1173 = vmatpush3.msra.mxu0 %v849_v30 }
 0x2c6   :  { %1060 = vmatprep.subr.mxu1 %v766_v57  ;;  %1174 = vmatprep.subr.mxu0 %v848_v8 }
 0x2c7   :  { %1061 = vmatpush3.msra.mxu1 %v750_v58  ;;  %1175 = vmatpush3.msra.mxu0 %v848_v8 }
 0x2c8   :  { %1062 = vmatprep.subr.mxu1 %v765_v59  ;;  %1176 = vmatprep.subr.mxu0 %v847_v31 }
 0x2c9   :  { %1063 = vmatpush3.msra.mxu1 %v749_v62  ;;  %1177 = vmatpush3.msra.mxu0 %v847_v31 }
 0x2ca   :  { %1064 = vmatprep.subr.mxu1 %v764_v28 }
 0x2cb   :  { %1065 = vmatpush3.msra.mxu1 %v748_v1 }
 0x2cc   :  { %1066 = vmatprep.subr.mxu1 %v763_v2 }
 0x2cd   :  { %1067 = vmatpush3.msra.mxu1 %v747_v5 }
 0x2ce   :  { %1068 = vmatprep.subr.mxu1 %v762_v7 }
 0x2cf   :  { %1069 = vmatpush3.msra.mxu1 %v746_v9 }
 0x2d0   :  { %1070 = vmatprep.subr.mxu1 %v761_v11 }
 0x2d1   :  { %1071 = vmatpush3.msra.mxu1 %v745_v13 }
 0x2d2   :  { %1072 = vmatprep.subr.mxu1 %v760_v15 }
 0x2d3   :  { %1073 = vmatpush3.msra.mxu1 %v744_v16 }
 0x2d4   :  { %1074 = vmatprep.subr.mxu1 %v759_v17 }
 0x2d5   :  { %1075 = vmatpush3.msra.mxu1 %v743_v19 }
 0x2d6   :  { %1076 = vmatprep.subr.mxu1 %v758_v21 }
 0x2d7   :  { %1077 = vmatpush3.msra.mxu1 %v742_v22 }
 0x2d8   :  { %1078 = vmatprep.subr.mxu1 %v757_v23 }
 0x2d9   :  { %1079 = vmatpush3.msra.mxu1 %v741_v24 }
 0x2da   :  { %1080 = vmatprep.subr.mxu1 %v756_v26 }
 0x2db   :  { %1081 = vmatpush3.msra.mxu1 %v740_v29 }
 0x2dc   :  { %837 = vmatmul.mubr.f32.vlgmr.msra.gmra.mxu1 %v1442_v45 }
 0x2dd   :  { %841 = vmatprep.mubr.f32.mxu1 %v1444_v46 }
 0x2e0   :  { %842 = vmatmul.mubr.f32.gmra.mxu1 %v1448_v47 }
 0x39c   :  { %v1082_v10 = vpop.f32.mrf.mxu1 }
 0x39e   :  { %v1083_v32 = vpop.f32.mrf.mxu1 }
 0x39f   :  { %v1084_v33 = vadd.f32 %v1083_v32, %v1082_v10 }
 0x3a0   :  { %v1085_v45 = vpop.f32.mrf.mxu1 }
 0x3a1   :  { %1178 = vmatprep.mubr.f32.mxu0 %v1084_v33 }
 0x3a2   :  { %v1086_v46 = vpop.f32.mrf.mxu1 }
 0x3a3   :  { %v1087_v34 = vadd.f32 %v1086_v46, %v1085_v45 }
 0x3a5   :  { %1179 = vmatmul.mubr.f32.vlgmr.msra.gmra.mxu0 %v1087_v34 }
 0x465   :  { %v1180_v47 = vpop.f32.mrf.mxu0 }
 0x466   :  { %v942_v38 = vadd.f32 %v1180_v47, %v990_v35 }
 0x467   :  { %v936_v36 = vpop.f32.mrf.mxu0 }
 0x468   :  { %v937_v37 = vadd.f32 %v990_v35, %v936_v36 }
 0x46a   :  { %945 = vmax.xlane.f32.xlu0 %v937_v37 }
 0x46e   :  { %947 = vmax.xlane.f32.xlu0 %v942_v38 }
 0x4f3   :  { %v946_v40 = vpop.xlane.xlu0 %945 }
 0x4f4   :  { %v949_v41 = vsub.f32 %v937_v37, %v946_v40 }
 0x4f6   :  { %v951_v42 = vmul.f32 1.442695, %v949_v41 }
 0x4f7   :  { %v948_v43 = vpop.xlane.xlu0 %947 }
 0x4f8   :  { %v950_v44 = vsub.f32 %v942_v38, %v948_v43  ;;  %1190 = vpow2.f32 %v951_v42 }
 0x4fa   :  { %v953_v25 = vmul.f32 1.442695, %v950_v44 }
 0x4fc   :  { %1192 = vpow2.f32 %v953_v25 }
 0x505   :  { %v1191_v27 = vpop.eup %1190 }
 0x506   :  { %955 = vadd.xlane.f32.xlu1 %v1191_v27 }
 0x509   :  { %v1193_v48 = vpop.eup %1192 }
 0x50a   :  { %957 = vadd.xlane.f32.xlu1 %v1193_v48 }
 0x58f   :  { %v956_v49 = vpop.xlane.xlu1 %955 }
 0x590   :  { %1194 = vlog2.f32 %v956_v49 }
 0x593   :  { %v958_v50 = vpop.xlane.xlu1 %957 }
 0x594   :  { %1196 = vlog2.f32 %v958_v50 }
 0x59d   :  { %v1195_v51 = vpop.eup %1194 }
 0x59e   :  { %v960_v52 = vmul.f32 0.6931472, %v1195_v51 }
 0x5a0   :  { %v963_v53 = vsub.f32 %v949_v41, %v960_v52 }
 0x5a1   :  { %v1197_v54 = vpop.eup %1196 }
 0x5a2   :  { %v962_v55 = vmul.f32 0.6931472, %v1197_v54  ;;  %965 = vst [vmem:[#allocation8] sm:$0xff] %v963_v53 }
 0x5a4   :  { %v964_v3 = vsub.f32 %v950_v44, %v962_v55 }
 0x5a6   :  { %966 = vst [vmem:[#allocation8 + $0x8] sm:$0xff] %v964_v3 }
 0x5a7   :  { %1269 = shalt.err (!%p1266_p5)
}
 0x5a8   :  { %978 = dma.vmem_to_hbm [thread:$0]  %s973_s29, 256, %s1545_s8, [#allocation4], %s1285_s30, %s1285_s30, %s1286_s9  }
 0x5a9   :  { %1282 = dma.done.wait [#allocation4], 256  }
 0x5aa   :  { %1283 = vsyncadd [#allocation4], 4294967040 }
 0x5ab   :  { %982 = vsyncpa [#allocation3], 1 }
 0x5ac   :  { %983 = vsyncpa [#allocation6], 1 }
 0x5ad   :  { %984 = vsyncpa [#allocation4], 1 }

</bundles_post_ra>
